<compile_context>
chip_gen: v6e
topology: v6e:2x2x1
jax: 0.10.0
libtpu: 0.0.40
codegen_flags: <defaults>
</compile_context>

<pallas_src>
import math

import jax
import jax.numpy as jnp
from jax.experimental import pallas as pl
from jax.experimental.pallas import tpu as pltpu

# Set True to use the EUP approximate reciprocal (needs a looser test tolerance).
_APPROX_RECIP = False


def _vmem_limit_bytes():
    """Generation-aware scoped-VMEM budget (~3/4 of physical, capped)."""
    try:
        info = pltpu.get_tpu_info()
        cap = getattr(info, "vmem_capacity_bytes", None)
        if cap:
            return int(min(cap * 3 // 4, 96 * 1024 * 1024))
    except Exception:
        pass
    return 32 * 1024 * 1024  # known-safe fallback


def _pick_tile(n, cap):
    for c in (512, 256, 128, 64, 32, 16, 8):
        if c <= cap and n % c == 0:
            return c
    return n


# ----------------------------------------------------------------------------
# Pass 1: fused QKV projection (lane-dense, bf16 MXU, f32 accumulate).
# ----------------------------------------------------------------------------
def _qkv_proj_kernel(x_ref, w_ref, b_ref, o_ref):
    x = x_ref[...].astype(jnp.bfloat16)                              # (tr, width)
    acc = jnp.dot(x, w_ref[...], preferred_element_type=jnp.float32)  # (tr, 3W) f32
    o_ref[...] = (acc + b_ref[...]).astype(o_ref.dtype)              # bf16 store


# ----------------------------------------------------------------------------
# Pass 2: flash attention + fused output projection.
# ----------------------------------------------------------------------------
def _mha_flash_kernel(q_ref, k_ref, v_ref, wp_ref, bp_ref, o_ref,
                      m_scr, l_scr, acc_scr):
    heads = q_ref.shape[0]
    ki = pl.program_id(2)

    @pl.when(ki == 0)
    def _init():
        m_scr[...] = jnp.full(m_scr.shape, -jnp.inf, m_scr.dtype)
        l_scr[...] = jnp.zeros(l_scr.shape, l_scr.dtype)
        acc_scr[...] = jnp.zeros(acc_scr.shape, acc_scr.dtype)

    q = q_ref[...]                                   # (h, tq, c) bf16 (scale folded)
    k = k_ref[...]                                   # (h, tk, c) bf16 (scale folded)
    v = v_ref[...]                                   # (h, tk, c) bf16

    # Scores: batched over heads, contracting attn_ch. bf16 MXU, f32 accumulate.
    s = jnp.einsum("htc,hsc->hts", q, k, preferred_element_type=jnp.float32)

    # Online softmax update — all element-wise math stays f32 (v5e-safe).
    m_prev = m_scr[...]
    m_new = jnp.maximum(m_prev, jnp.max(s, axis=-1, keepdims=True))
    alpha = jnp.exp(m_prev - m_new)
    p = jnp.exp(s - m_new)
    l_scr[...] = alpha * l_scr[...] + jnp.sum(p, axis=-1, keepdims=True)
    acc_scr[...] = alpha * acc_scr[...] + jnp.einsum(
        "hts,hsc->htc", p.astype(jnp.bfloat16), v,
        preferred_element_type=jnp.float32)
    m_scr[...] = m_new

    @pl.when(ki == pl.num_programs(2) - 1)
    def _finalize():
        # Normalize once per q-tile (EUP reciprocal), then fuse the output
        # projection: per-head (tq, attn_ch) @ (attn_ch, width) MXU dots are
        # accumulated directly into a single (tq, width) f32 tile — no
        # (heads, tq, width) intermediate and no separate cross-head reduce.
        inv_l = pl.reciprocal(l_scr[...], approx=_APPROX_RECIP)      # (h, tq, 1)
        tq, width = o_ref.shape
        y = jnp.zeros((tq, width), jnp.float32)
        for h in range(heads):  # static unroll; runs once per q-tile only
            attn_h = (acc_scr[h] * inv_l[h]).astype(jnp.bfloat16)    # (tq, c)
            y = y + jnp.dot(attn_h, wp_ref[h], preferred_element_type=jnp.float32)
        o_ref[...] = (y + bp_ref[...]).astype(o_ref.dtype)


def multihead_attention(x, w_qkv, b_qkv, w_proj, b_proj, *, heads,
                        tq=None, tk=None, row_tile=None):
    """x: (bs, n_ctx, width); w_qkv: (width, 3*width); w_proj: (width, width).

    Weights are in x @ W ([in, out]) layout; out-feature ordering matches the
    PyTorch module (per-head [q|k|v] channel blocks from the view+split).
    """
    bs, n_ctx, width = x.shape
    assert width % heads == 0
    attn_ch = width // heads

    # --- trace-time weight prep ---------------------------------------------
    # Reorder c_qkv columns from (head, {q,k,v}, c) to ({q,k,v}, head, c) so
    # pass 1 is one lane-dense matmul, and fold the symmetric softmax scale
    # (1/attn_ch**0.25) into BOTH Wq and Wk (and their biases) — bf16-friendly.
    scale = 1.0 / math.sqrt(math.sqrt(attn_ch))
    wh = w_qkv.reshape(width, heads, 3, attn_ch)
    w_all = jnp.concatenate(
        [(wh[:, :, 0, :] * scale).reshape(width, width),
         (wh[:, :, 1, :] * scale).reshape(width, width),
         wh[:, :, 2, :].reshape(width, width)], axis=-1).astype(jnp.bfloat16)
    bh = b_qkv.reshape(heads, 3, attn_ch)
    b_all = jnp.concatenate(
        [(bh[:, 0, :] * scale).reshape(width),
         (bh[:, 1, :] * scale).reshape(width),
         bh[:, 2, :].reshape(width)]).reshape(1, 3 * width).astype(jnp.float32)
    wp = w_proj.reshape(heads, attn_ch, width).astype(jnp.bfloat16)   # (h, c, W)
    bp = b_proj.reshape(1, width).astype(jnp.float32)

    vmem_bytes = _vmem_limit_bytes()

    # --- pass 1: QKV projection ---------------------------------------------
    row_tile = row_tile or _pick_tile(n_ctx, 256)
    assert n_ctx % row_tile == 0
    proj_flops = 2 * bs * n_ctx * width * 3 * width
    proj_bytes = (x.size * x.dtype.itemsize + w_all.size * 2 + b_all.size * 4
                  + bs * n_ctx * 3 * width * 2)
    qkv = pl.pallas_call(
        _qkv_proj_kernel,
        out_shape=jax.ShapeDtypeStruct((bs, n_ctx, 3 * width), jnp.bfloat16),
        grid_spec=pltpu.PrefetchScalarGridSpec(
            num_scalar_prefetch=0,
            grid=(bs, n_ctx // row_tile),
            in_specs=[
                pl.BlockSpec((None, row_tile, width), lambda b, i: (b, i, 0)),
                # Constant-index weight/bias blocks (bf16: a few MiB double-
                # buffered; single-buffering via pl.Buffered(1) if VMEM-tight).
                pl.BlockSpec((width, 3 * width), lambda b, i: (0, 0)),
                pl.BlockSpec((1, 3 * width), lambda b, i: (0, 0)),
            ],
            out_specs=pl.BlockSpec((None, row_tile, 3 * width),
                                   lambda b, i: (b, i, 0))),
        compiler_params=pltpu.CompilerParams(
            dimension_semantics=("parallel", "parallel"),
            vmem_limit_bytes=vmem_bytes),
        cost_estimate=pl.CostEstimate(flops=proj_flops, transcendentals=0,
                                      bytes_accessed=proj_bytes),
    )(x, w_all, b_all)

    # Layout plumbing only (plain XLA, outside the kernels): head-major Q/K/V
    # so the flash kernel streams lane-dense (heads, tile, attn_ch) blocks.
    qkv = qkv.reshape(bs, n_ctx, 3, heads, attn_ch)
    qkv = jnp.transpose(qkv, (2, 0, 3, 1, 4))      # (3, bs, heads, n_ctx, attn_ch)

    # --- pass 2: flash attention + fused output projection -------------------
    tq = tq or _pick_tile(n_ctx, 256)
    tk = tk or _pick_tile(n_ctx, 128)   # keep the (heads, tq, tk) score block modest
    assert n_ctx % tq == 0 and n_ctx % tk == 0
    grid = (bs, n_ctx // tq, n_ctx // tk)

    q_spec = pl.BlockSpec((None, None, heads, tq, attn_ch),
                          lambda b, qi, ki: (0, b, 0, qi, 0))
    k_spec = pl.BlockSpec((None, None, heads, tk, attn_ch),
                          lambda b, qi, ki: (1, b, 0, ki, 0))
    v_spec = pl.BlockSpec((None, None, heads, tk, attn_ch),
                          lambda b, qi, ki: (2, b, 0, ki, 0))

    flash_flops = 4 * bs * heads * n_ctx * n_ctx * attn_ch + 2 * bs * n_ctx * width * width
    flash_trans = bs * heads * n_ctx * n_ctx
    flash_bytes = (qkv.size * 2 + wp.size * 2 + bp.size * 4
                   + bs * n_ctx * width * x.dtype.itemsize)

    return pl.pallas_call(
        _mha_flash_kernel,
        out_shape=jax.ShapeDtypeStruct((bs, n_ctx, width), x.dtype),
        grid_spec=pltpu.PrefetchScalarGridSpec(
            num_scalar_prefetch=0,
            grid=grid,
            in_specs=[
                q_spec, k_spec, v_spec,
                pl.BlockSpec((heads, attn_ch, width), lambda b, qi, ki: (0, 0, 0)),
                pl.BlockSpec((1, width), lambda b, qi, ki: (0, 0)),
            ],
            out_specs=pl.BlockSpec((None, tq, width), lambda b, qi, ki: (b, qi, 0)),
            scratch_shapes=[
                pltpu.VMEM((heads, tq, 1), jnp.float32),        # running max
                pltpu.VMEM((heads, tq, 1), jnp.float32),        # running sum
                pltpu.VMEM((heads, tq, attn_ch), jnp.float32),  # output accumulator
            ]),
        compiler_params=pltpu.CompilerParams(
            # NOTE: the kv axis MUST stay the innermost, "arbitrary" grid axis
            # and the output index_map must ignore it — the online-softmax
            # scratch and the resident output block are carried across it.
            dimension_semantics=("parallel", "parallel", "arbitrary"),
            vmem_limit_bytes=vmem_bytes),
        cost_estimate=pl.CostEstimate(flops=flash_flops,
                                      transcendentals=flash_trans,
                                      bytes_accessed=flash_bytes),
    )(qkv, qkv, qkv, wp, bp)


def multihead_attention_ref(x, w_qkv, b_qkv, w_proj, b_proj, *, heads):
    """Pure-JAX reference mirroring the PyTorch module exactly (f32)."""
    bs, n_ctx, width = x.shape
    attn_ch = width // heads
    scale = 1.0 / math.sqrt(math.sqrt(attn_ch))
    qkv = jnp.einsum("btw,wo->bto", x, w_qkv) + b_qkv
    qkv = qkv.reshape(bs, n_ctx, heads, 3 * attn_ch)
    q, k, v = jnp.split(qkv, 3, axis=-1)
    w = jnp.einsum("bthc,bshc->bhts", q * scale, k * scale)
    w = jax.nn.softmax(w.astype(jnp.float32), axis=-1).astype(w.dtype)
    out = jnp.einsum("bhts,bshc->bthc", w, v).reshape(bs, n_ctx, width)
    return jnp.einsum("btw,wo->bto", out, w_proj) + b_proj


if __name__ == "__main__":
    # Module config (small, consistent with the PyTorch __init__)
    batch, n_ctx, width, heads = 2, 16, 32, 4
    init_scale = 0.25

    key = jax.random.PRNGKey(0)
    kx, kqkv, kproj, kbq, kbp = jax.random.split(key, 5)

    x = jax.random.normal(kx, (batch, n_ctx, width), dtype=jnp.float32)

    # nn.Linear(width, 3*width): weight (3*width, width) ~ N(0, init_scale);
    # stored transposed ([in, out]) so the kernel computes x @ W + b.
    w_qkv = (jax.random.normal(kqkv, (3 * width, width), jnp.float32) * init_scale).T
    b_qkv = jax.random.normal(kbq, (3 * width,), jnp.float32) * 0.1
    w_proj = (jax.random.normal(kproj, (width, width), jnp.float32) * init_scale).T
    b_proj = jax.random.normal(kbp, (width,), jnp.float32) * 0.1

    ref = multihead_attention_ref(x, w_qkv, b_qkv, w_proj, b_proj, heads=heads)

    # Tiled path: grids (2, 2) and (2, 2, 2) exercise the online-softmax
    # accumulation across kv tiles, multiple q tiles and multiple row tiles.
    out = multihead_attention(x, w_qkv, b_qkv, w_proj, b_proj,
                              heads=heads, tq=8, tk=8, row_tile=8)
    out = jax.block_until_ready(out)
    assert out.shape == (batch, n_ctx, width)
    # bf16 MXU operands (per perf review) vs the f32 reference -> loose tolerance.
    assert jnp.allclose(out, ref, atol=1e-1, rtol=1e-1), "mismatch (tiled) vs reference"

    # Default tile selection (single kv tile per q tile at this n_ctx).
    out2 = multihead_attention(x, w_qkv, b_qkv, w_proj, b_proj, heads=heads)
    out2 = jax.block_until_ready(out2)
    assert jnp.allclose(out2, ref, atol=1e-1, rtol=1e-1), "mismatch (default) vs reference"

    print("KERNEL_OK")
</pallas_src>

<mosaic_0001>
module attributes {stable_mosaic.version = 11 : i64} {
  func.func @_qkv_proj_kernel(%arg0: i32, %arg1: i32, %arg2: memref<1x8x32xf32, #tpu.memory_space<vmem>>, %arg3: memref<32x96xbf16, #tpu.memory_space<vmem>>, %arg4: memref<1x96xf32, #tpu.memory_space<vmem>>, %arg5: memref<1x8x96xbf16, #tpu.memory_space<vmem>>) attributes {dimension_semantics = [#tpu.dimension_semantics<parallel>, #tpu.dimension_semantics<parallel>], iteration_bounds = array<i64: 2, 2>, scalar_prefetch = 0 : i64, scratch_operands = 0 : i64, tpu.core_type = #tpu.core_type<tc>, window_params = [{transform_indices = @transform_0, window_bounds = array<i64: 1, 8, 32>}, {pipeline_mode = #tpu.pipeline_mode<synchronous>, transform_indices = @transform_1, window_bounds = array<i64: 32, 96>}, {pipeline_mode = #tpu.pipeline_mode<synchronous>, transform_indices = @transform_2, window_bounds = array<i64: 1, 96>}, {transform_indices = @transform_3, window_bounds = array<i64: 1, 8, 96>}]} {
    %c0 = arith.constant 0 : index
    %c0_0 = arith.constant 0 : index
    %c0_1 = arith.constant 0 : index
    %0 = vector.load %arg2[%c0, %c0_0, %c0_1] : memref<1x8x32xf32, #tpu.memory_space<vmem>>, vector<1x8x32xf32>
    %1 = vector.shape_cast %0 : vector<1x8x32xf32> to vector<8x32xf32>
    %2 = arith.truncf %1 : vector<8x32xf32> to vector<8x32xbf16>
    %c0_2 = arith.constant 0 : index
    %c0_3 = arith.constant 0 : index
    %3 = vector.load %arg3[%c0_2, %c0_3] : memref<32x96xbf16, #tpu.memory_space<vmem>>, vector<32x96xbf16>
    %cst = arith.constant dense<0.000000e+00> : vector<8x96xf32>
    %4 = tpu.matmul %2, %3, %cst {dimension_numbers = #tpu.dot_dimension_numbers<[1], [0], [0], [1], [0, 0, 1, 1], [], []>} : vector<8x32xbf16>, vector<32x96xbf16>, vector<8x96xf32> -> vector<8x96xf32>
    %c0_4 = arith.constant 0 : index
    %c0_5 = arith.constant 0 : index
    %5 = vector.load %arg4[%c0_4, %c0_5] : memref<1x96xf32, #tpu.memory_space<vmem>>, vector<1x96xf32>
    %6 = vector.broadcast %5 : vector<1x96xf32> to vector<8x96xf32>
    %7 = arith.addf %4, %6 : vector<8x96xf32>
    %8 = arith.truncf %7 : vector<8x96xf32> to vector<8x96xbf16>
    %c0_6 = arith.constant 0 : index
    %c0_7 = arith.constant 0 : index
    %c0_8 = arith.constant 0 : index
    %9 = vector.load %arg5[%c0_6, %c0_7, %c0_8] : memref<1x8x96xbf16, #tpu.memory_space<vmem>>, vector<1x8x96xbf16>
    %10 = vector.shape_cast %9 : vector<1x8x96xbf16> to vector<8x96xbf16>
    %11 = vector.shape_cast %8 : vector<8x96xbf16> to vector<1x8x96xbf16>
    tpu.vector_store %arg5[%c0_6, %c0_7, %c0_8], %11 {strides = array<i32>} : memref<1x8x96xbf16, #tpu.memory_space<vmem>>, vector<1x8x96xbf16>,
    return
  }
  func.func @transform_0(%arg0: i32, %arg1: i32) -> (i32, i32, i32) {
    %c0_i32 = arith.constant 0 : i32
    %c0_i32_0 = arith.constant 0 : i32
    return %arg0, %arg1, %c0_i32 : i32, i32, i32
  }
  func.func @transform_1(%arg0: i32, %arg1: i32) -> (i32, i32) {
    %c0_i32 = arith.constant 0 : i32
    %c0_i32_0 = arith.constant 0 : i32
    %c0_i32_1 = arith.constant 0 : i32
    return %c0_i32, %c0_i32_0 : i32, i32
  }
  func.func @transform_2(%arg0: i32, %arg1: i32) -> (i32, i32) {
    %c0_i32 = arith.constant 0 : i32
    %c0_i32_0 = arith.constant 0 : i32
    %c0_i32_1 = arith.constant 0 : i32
    return %c0_i32, %c0_i32_0 : i32, i32
  }
  func.func @transform_3(%arg0: i32, %arg1: i32) -> (i32, i32, i32) {
    %c0_i32 = arith.constant 0 : i32
    %c0_i32_0 = arith.constant 0 : i32
    return %arg0, %arg1, %c0_i32 : i32, i32, i32
  }
}

</mosaic_0001>

<bundles_post_ra>
// kernel: tpu_custom_call.1
= control target key start
LH: loop header
LB: loop body
LE: loop exit
PB: predicated region body
PF: predicated region fallthrough
CT: control target
= control target key end

     0   :  { %s912_s0 = inlined_call_operand.hbm [shape: f32[2,16,32], index: 0, kind: input, shape index: {}]   ;;  %s913_s1 = inlined_call_operand.hbm [shape: bf16[32,96], index: 1, kind: input, shape index: {}]   ;;  %s914_s2 = inlined_call_operand.vmem [shape: f32[1,96], index: 2, kind: input, shape index: {}]   ;;  %s915_s3 = inlined_call_operand.hbm [shape: bf16[2,16,96], index: 3, kind: output, shape index: {}]  }
   0x1   :  { %921 = sst [smem:[#allocation14_spill]] %s913_s1 }
   0x2   :  { %922 = sst [smem:[#allocation15_spill]] %s915_s3 }
   0x3   :  { %8 = vsyncpa [#allocation3], 0 }
   0x4   :  { %10 = vsyncpa [#allocation3 + $0x1], 0 }
   0x5   :  { %11 = vsyncpa [#allocation6], 0 }
   0x6   :  { %12 = vsyncpa [#allocation4], 0 }
   0x7   :  { %14 = vsyncpa [#allocation4 + $0x1], 0  ;;  %s713_s12 = smov 0   ;;  %s715_s13 = smov 0  }
   0x8   :  { %s717_s14 = smov 0   ;;  %s719_s15 = smov 0  }
   0x9   :  { %s721_s16 = smov 0   ;;  %s723_s17 = smov 0  }
   0xa   :  { %s725_s18 = smov 0   ;;  %s727_s19 = smov 0  }
   0xb LB: > { %923 = sst [smem:[#allocation11_spill]] %s656_s12  ;;  %s403_s20 = sadd.s32 4294967295, %s684_s19   ;;  %s684_s19 = sphi %s727_s19, %s20_s19   ;;  %s680_s18 = sphi %s725_s18, %s947_s18   ;;  %s676_s17 = sphi %s723_s17, %s946_s17   ;;  %s672_s16 = sphi %s721_s16, %s945_s16   ;;  %s668_s15 = sphi %s719_s15, %s944_s15   ;;  %s664_s14 = sphi %s717_s14, %s943_s14   ;;  %s660_s13 = sphi %s715_s13, %s942_s13   ;;  %s656_s12 = sphi %s713_s12, %s941_s12  }
   0xc   : > { %s404_s21 = sadd.s32 4294967294, %s684_s19   ;;  %p54_p0 = scmp.ne.s32.totalorder %s660_s13, %s656_s12 }
   0xd   : > { %p757_p1 = scmp.eq.s32.totalorder %s403_s20, 0  ;;  %p761_p2 = scmp.eq.s32.totalorder %s403_s20, 3 }
   0xe   : > { %p128_p3 = scmp.eq.s32.totalorder %s404_s21, 3  ;;  %p405_p5 = scmp.ge.s32.totalorder %s684_s19, 1 }
   0xf   : > { %p767_p4 = por %p757_p1, %p54_p0  ;;  %p135_p7 = scmp.lt.s32.totalorder %s684_s19, 5 }
  0x10   : > { %p772_p6 = por %p128_p3, %p54_p0  ;;  %s686_s27 = smov [#allocation5]  }
  0x11   : > { %s926_s24 = scalar_select %p767_p4, 1, 0 }
  0x12   : > { %s927_s25 = scalar_select %p772_p6, 1, 0 }
  0x13   : > { %p777_p8 = pnand %p405_p5, %p135_p7  ;;  %s147_s28 = sshll.u32 %s686_s27, 4  ;;  %s148_s28 = int_to_ptr.vmem [resolvable:$true] %s147_s28 }
  0x14   : > { %928 = sst [smem:[#allocation12_spill]] %s927_s25  ;;  %s541_s29 = scalar_lea.vmem %s148_s28, 256 }
  0x15   : > { %p443_p9 = pneg %p777_p8  ;;  %p542_p12 = scmp.ne.s32.totalorder %s148_s28, %s541_s29 }
  0x16   : > { %p549_p3 = scmp.lt.s32.totalorder %s148_s28, %s148_s28  ;;  %p550_p6 = scmp.lt.s32.totalorder %s541_s29, %s541_s29 }
  0x17   : > { %p444_p10 = pnand %p443_p9, %p757_p1 }
  0x18   : > { %p551_p4 = por %p550_p6, %p549_p3 }
  0x19   : > { %p532_p11 = pneg %p444_p10 }
  0x1b   : > { %p544_p13 = pnand %p542_p12, %p532_p11 }
  0x1d   : > { %p545_p0 = pneg %p544_p13 }
  0x1f   : > { %p552_p5 = pnand %p551_p4, %p545_p0 }
  0x21   : > { %555 = shalt.err (!%p552_p5)
}
  0x22   : > { %s687_s30 = smov 64   ;;  %s688_s4 = smov 4  }
  0x23   : > { %s930_s1 = sld [smem:[#allocation14_spill]]  ;;  %s29_s7 = sadd.s32 1, %s676_s17 }
  0x24   : > { %p30_p4 = scmp.ge.s32.totalorder %s29_s7, 2  ;;  %s32_s8 = sadd.s32 1, %s680_s18 }
  0x25   : > { %s41_s9 = sadd.s32 1, %s664_s14  ;;  %p48_p6 = scmp.ne.s32.totalorder %s664_s14, %s660_s13 }
  0x26   : > { %s949_s7 = smov (%p30_p4, %s29_s7), 0  ;;  %s951_s8 = smov (!%p30_p4, %s32_s8), %s680_s18 }
  0x27   : > { %931 = sst [smem:[#allocation13_spill]] %s949_s7  ;;  %s37_s10 = ssub.s32 %s676_s17, %s949_s7 }
  0x28   : > { %p49_p7 = scmp.eq.s32.totalorder %s684_s19, 0  ;;  %p34_p9 = scmp.ge.s32.totalorder %s951_s8, 2 }
  0x29   : > { %446 = dma.hbm_to_vmem [thread:$0]  (!%p444_p10), %s930_s1, 256, %s148_s28, [#allocation6], %s687_s30, %s687_s30, %s688_s4  }
  0x2a   : > { %p801_p11 = por %p761_p2, %p48_p6  ;;  %p805_p10 = por %p49_p7, %p48_p6 }
  0x2b   : > { %p456_p12 = scmp.lt.s32.totalorder %s684_s19, 4  ;;  %s953_s8 = smov (%p34_p9, %s951_s8), 0 }
  0x2c   : > { %s164_s21 = sand.u32 1, %s664_s14   ;;  %s409_s27 = sshll.u32 %s680_s18, 1 }
  0x2d   : > { %s36_s28 = ssub.s32 %s680_s18, %s953_s8  ;;  %s408_s30 = sshll.u32 %s164_s21, 3 }
  0x2e   : > { %s38_s29 = sor.u32 %s37_s10, %s36_s28  ;;  %s173_s23 = sadd.s32 %s676_s17, %s409_s27 }
  0x2f   : > { %p39_p13 = scmp.eq.s32.totalorder %s38_s29, 0  ;;  %s168_s4 = scalar_lea.vmem [#allocation2], %s408_s30 }
  0x30   : > { %s177_s5 = sshll.u32 %s168_s4, 4  ;;  %s410_s1 = sshll.u32 %s173_s23, 7  ;;  %s178_s5 = int_to_ptr.vmem [resolvable:$true] %s177_s5 }
  0x31   : > { %s818_s6 = scalar_select %p39_p13, %s664_s14, %s41_s9  }
  0x32   : > { %s175_s12 = scalar_lea.hbm %s912_s0, %s410_s1  ;;  %p827_p2 = pnand %p456_p12, %p805_p10 }
  0x33   : > { %s165_s10 = scalar_lea.sflag [#allocation3], %s164_s21  ;;  %s569_s27 = scalar_lea.vmem %s178_s5, 128 }
  0x34   : > { %p558_p0 = pneg %p827_p2  ;;  %p570_p3 = scmp.ne.s32.totalorder %s178_s5, %s569_s27 }
  0x35   : > { %s689_s9 = smov [#allocation2]  }
  0x36   : > { %p572_p5 = pnand %p570_p3, %p558_p0  ;;  %s574_s28 = sshll.u32 %s689_s9, 4  ;;  %s575_s28 = int_to_ptr.vmem [resolvable:$false] %s574_s28 }
  0x37   : > { %s576_s29 = scalar_lea.vmem %s575_s28, 256  ;;  %p577_p6 = scmp.lt.s32.totalorder %s178_s5, %s575_s28 }
  0x38   : > { %p573_p4 = pneg %p572_p5  ;;  %p578_p7 = scmp.lt.s32.totalorder %s576_s29, %s569_s27 }
  0x3a   : > { %p579_p9 = por %p578_p7, %p577_p6 }
  0x3c   : > { %p580_p13 = pnand %p579_p9, %p573_p4 }
  0x3e   : > { %583 = shalt.err (!%p580_p13)
}
  0x3f   : > { %450 = dma.hbm_to_vmem [thread:$0]  (!%p827_p2), %s175_s12, 128, %s178_s5, %s165_s10  }
  0x40   : > { %186 = sbr.rel (%p777_p8) target bundleno = 292 (0x124), region = 32  ;;  %s838_s1 = sand.u32 (!%p777_p8), 1, %s660_s13  }
  0x41   : > { %s412_s25 = sshll.u32 (!%p777_p8), %s838_s1, 3  ;;  %s189_s7 = scalar_lea.sflag (!%p777_p8), [#allocation3], %s838_s1 }
  0x42   : > { %s192_s20 = scalar_lea.vmem (!%p777_p8), [#allocation2], %s412_s25  ;;  %p935_p10 = scmp.ne.s32.totalorder (!%p777_p8), %s926_s24, 0 }
  0x45   : > { %643 = dma.done.wait (%p935_p10), %s189_s7, 128  }
  0x46   : > { %645 = vsyncadd (%p935_p10), %s189_s7, 4294967168 }
  0x47   : > { %647 = dma.done.wait (%p757_p1), [#allocation6], 256  }
  0x48   : > { %649 = vsyncadd (%p757_p1), [#allocation6], 4294967040  ;;  %v690_v0 = vmov 0.0   ;;  %vm691_vm0 = vmmov 0   ;;  %v528_v1 = vld [vmem:[#allocation5 + $0x8] sm:$0xff]   ;;  %v529_v2 = vld [vmem:[#allocation5] sm:$0xff]  }
  0x49   : > { %427 = vmatprep.subr.bf16.mxu0 %v690_v0  ;;  %431 = vmatprep.mubr.msk.bf16.mxu0 %vm691_vm0, %v690_v0  ;;  %v220_v3 = vld [vmem:[%s192_s20] sm:$0xff]  ;;  %vm245_vm1 = vcmask 261120   ;;  %s414_s3 = sshll.u32 %s838_s1, 2  ;;  %s420_s12 = sshll.u32 %s672_s16, 1  ;;  %vm290_vm2 = vcmask 781312  }
  0x4a   : > { %428 = vmatpush3.bf16.msra.mxu0 %v528_v1  ;;  %v221_v4 = vpack.c.bf16 %v220_v3, %v220_v3  ;;  %s304_s22 = sadd.s32 %s668_s15, %s420_s12  ;;  %v415_v5 = vld [vmem:[%s914_s2] ss:$0 sm:$0xff]  ;;  %s218_s30 = scalar_lea.vmem [#allocation7], %s414_s3 }
  0x4b   : > { %429 = vmatprep.subr.bf16.mxu0 %v690_v0  ;;  %s421_s21 = sshll.u32 %s304_s22, 6  ;;  %s308_s23 = sshll.u32 %s218_s30, 4  ;;  %s861_s23 = int_to_ptr.vmem [resolvable:$true] %s308_s23 }
  0x4c   : > { %s936_s10 = sld [smem:[#allocation15_spill]]  ;;  %s293_s15 = scalar_lea.sflag [#allocation4], %s838_s1 }
  0x4d   : > { %s584_s16 = scalar_lea.vmem %s861_s23, 64  ;;  %s692_s9 = smov [#allocation7]  }
  0x4e   : > { %430 = vmatpush3.bf16.msra.mxu0 %v529_v2  ;;  %p585_p1 = scmp.ne.s32.totalorder %s861_s23, %s584_s16  ;;  %s588_s28 = sshll.u32 %s692_s9, 4  ;;  %s589_s28 = int_to_ptr.vmem [resolvable:$false] %s588_s28 }
  0x4f   : > { %s590_s29 = scalar_lea.vmem %s589_s28, 128  ;;  %p591_p2 = scmp.lt.s32.totalorder %s861_s23, %s589_s28 }
  0x50   : > { %p586_p8 = pnand %p585_p1, %p801_p11  ;;  %p592_p0 = scmp.lt.s32.totalorder %s590_s29, %s584_s16 }
  0x51   : > { %432 = vmatmul.mubr.msk.bf16.vlgmr.msra.gmra.mxu0 %vm245_vm1, %v221_v4 }
  0x52   : > { %s859_s27 = scalar_lea.hbm %s936_s10, %s421_s21  ;;  %p587_p12 = pneg %p586_p8 }
  0x53   : > { %p593_p3 = por %p592_p0, %p591_p2 }
  0x55   : > { %p594_p5 = pnand %p593_p3, %p587_p12 }
 0x111   : > { %v283_v6 = vpop.f32.mrf.mxu0 }
 0x112   : > { %v284_v7 = vadd.f32 %v415_v5, %v283_v6 }
 0x113   : > { %v433_v8 = vpop.f32.mrf.mxu0 }
 0x114   : > { %v289_v9 = vpack.c.bf16 %v284_v7, %v284_v7 }
 0x115   : > { %v286_v10 = vpop.f32.mrf.mxu0 }
 0x116   : > { %291 = vst.msk [vmem:[%s218_s30] sm:$0xf] %vm290_vm2, %v289_v9 }
 0x117   : > { %v434_v11 = vpop.f32.mrf.mxu0 }
 0x118   : > { %597 = shalt.err (!%p594_p5)
}
 0x119   : > { %s598_s25 = scalar_lea.hbm %s859_s27, 64  ;;  %s602_s20 = scalar_lea.hbm %s936_s10, 256 }
 0x11a   : > { %p599_p4 = scmp.ne.s32.totalorder %s859_s27, %s598_s25  ;;  %p603_p9 = scmp.lt.s32.totalorder %s859_s27, %s936_s10 }
 0x11b   : > { %p604_p13 = scmp.lt.s32.totalorder %s602_s20, %s598_s25 }
 0x11c   : > { %p600_p6 = pnand %p599_p4, %p801_p11 }
 0x11d   : > { %p605_p10 = por %p604_p13, %p603_p9 }
 0x11e   : > { %p601_p7 = pneg %p600_p6 }
 0x120   : > { %p606_p1 = pnand %p605_p10, %p601_p7 }
 0x122   : > { %609 = shalt.err (!%p606_p1)
}
 0x123   : > { %441 = dma.vmem_to_hbm [thread:$0]  (%p801_p11), %s861_s23, 64, %s859_s27, %s293_s15  }
 0x124 PF: > { %s937_s22 = sld [smem:[#allocation11_spill]]  ;;  %p458_p8 = scmp.ge.s32.totalorder %s684_s19, 2 }
 0x125   : > { %s938_s24 = sld [smem:[#allocation12_spill]] }
 0x12a   : > { %s320_s26 = sand.u32 1, %s937_s22  }
 0x12b   : > { %p939_p12 = scmp.ne.s32.totalorder %s938_s24, 0  ;;  %s321_s21 = scalar_lea.sflag [#allocation4], %s320_s26 }
 0x12d   : > { %p452_p2 = pnand %p458_p8, %p939_p12 }
 0x12f   : > { %p453_p0 = pneg %p452_p2 }
 0x131   : > { %651 = dma.done.wait (%p453_p0), %s321_s21, 64  }
 0x132   : > { %653 = vsyncadd (%p453_p0), %s321_s21, 4294967232  ;;  %s20_s19 = sadd.s32 1, %s684_s19   ;;  %s940_s11 = sld [smem:[#allocation13_spill]] }
 0x133   : > { %p17_p3 = scmp.ge.s32.totalorder %s20_s19, 6   ;;  %s941_s12 = smov %s660_s13 }
 0x134   : > { %s942_s13 = smov %s664_s14  ;;  %s943_s14 = smov %s818_s6 }
 0x135   : > { %s944_s15 = smov %s676_s17  ;;  %s945_s16 = smov %s680_s18 }
 0x136   : > { %s947_s18 = smov %s953_s8  ;;  %19 = sbr.rel (!%p17_p3) target bundleno = 11 (0xb), region = 81 }
 0x138   : > { %s946_s17 = smov %s940_s11 }
 0x13b   :  { %326 = vsyncpa [#allocation3], 1 }
 0x13c   :  { %328 = vsyncpa [#allocation3 + $0x1], 1 }
 0x13d   :  { %329 = vsyncpa [#allocation6], 1 }
 0x13e   :  { %330 = vsyncpa [#allocation4], 1 }
 0x13f   :  { %332 = vsyncpa [#allocation4 + $0x1], 1 }

</bundles_post_ra>
